<compile_context>
chip_gen: v6e
topology: v6e:2x2x1
jax: 0.10.0
libtpu: 0.0.40
codegen_flags: <defaults>
</compile_context>

<pallas_src>
import jax
import jax.numpy as jnp
from jax.experimental import pallas as pl
from jax.experimental.pallas import tpu as pltpu

EPS = 1e-5

IN_DIM = 8            # fc1 input features
OUT_DIM = 140         # fc3 logical output features
H_PAD = 128           # hidden features padded to one full lane tile
OUT_PAD = 256         # output features padded to 2 * 128 lanes
W23_PAD = H_PAD + OUT_PAD   # fc2 and fc3 weights concatenated column-wise
NVEC = 8              # rows in the small-vector parameter slab


# ---------------------------------------------------------------------------
# Kernel: one grid step == one Net's forward over its full batch.
# ---------------------------------------------------------------------------
def net_kernel(x_ref, w1_ref, w23_ref, vec_ref, o_ref):
    x = x_ref[...]                     # (B, 8)        f32
    w1 = w1_ref[...]                   # (8, 128)      bf16
    w23 = w23_ref[...]                 # (128, 384)    bf16  [w2 | w3]
    vec = vec_ref[...]                 # (8, 384)      f32   small vectors

    g1, be1 = vec[0:1, :H_PAD], vec[1:2, :H_PAD]
    g2, be2 = vec[2:3, :H_PAD], vec[3:4, :H_PAD]
    b3 = vec[4:5, :OUT_PAD]

    w2 = w23[:, :H_PAD]                # lane-aligned slices: free
    w3 = w23[:, H_PAD:]

    inv_b = 1.0 / float(x.shape[0])

    def bn_relu(h_pre, g, be):
        # Training-mode BatchNorm on (h_pre + bias): the bias cancels exactly
        # (mean shifts by the same amount, variance is bias-invariant), so the
        # statistics are taken on the pre-bias matmul output directly.
        # Single reduction pass: mean and E[h^2]; everything stays f32.
        mean = jnp.sum(h_pre, axis=0, keepdims=True) * inv_b
        ex2 = jnp.sum(h_pre * h_pre, axis=0, keepdims=True) * inv_b
        var = jnp.maximum(ex2 - mean * mean, 0.0)      # biased var (train mode)
        scale = g * jax.lax.rsqrt(var + EPS)
        shift = be - mean * scale
        return jnp.maximum(h_pre * scale + shift, 0.0)

    # ---- fc1 + BN + ReLU ----  (bf16 operands on the MXU, f32 accumulation)
    h = jnp.dot(x.astype(jnp.bfloat16), w1, preferred_element_type=jnp.float32)
    h = bn_relu(h, g1, be1)

    # ---- fc2 + BN + ReLU ----
    h = jnp.dot(h.astype(jnp.bfloat16), w2, preferred_element_type=jnp.float32)
    h = bn_relu(h, g2, be2)

    # ---- fc3 ----  (only layer whose bias survives: no BN after it)
    out = jnp.dot(h.astype(jnp.bfloat16), w3, preferred_element_type=jnp.float32) + b3

    o_ref[...] = out.astype(o_ref.dtype)       # lane-dense (B, 256) store


# ---------------------------------------------------------------------------
# Wrapper: grid over the population axis.
# ---------------------------------------------------------------------------
def net_forward(x, packed_params):
    """x: (P, B, 8) f32.  packed_params: (w1, w23, vec) each with leading P.

    Returns the lane-dense (P, B, 256) output; the consumer slices [:, :, :140].
    """
    w1, w23, vec = packed_params
    P, B, _ = x.shape

    return pl.pallas_call(
        net_kernel,
        out_shape=jax.ShapeDtypeStruct((P, B, OUT_PAD), jnp.float32),
        grid=(P,),
        in_specs=[
            pl.BlockSpec((None, B, IN_DIM), lambda p: (p, 0, 0)),
            pl.BlockSpec((None, IN_DIM, H_PAD), lambda p: (p, 0, 0)),
            pl.BlockSpec((None, H_PAD, W23_PAD), lambda p: (p, 0, 0)),
            pl.BlockSpec((None, NVEC, W23_PAD), lambda p: (p, 0, 0)),
        ],
        out_specs=pl.BlockSpec((None, B, OUT_PAD), lambda p: (p, 0, 0)),
        compiler_params=pltpu.CompilerParams(
            dimension_semantics=("parallel",),   # shard nets across TCs on v7x
        ),
    )(x, w1, w23, vec)


# ---------------------------------------------------------------------------
# Parameter construction (matches PyTorch __init__ semantics)
# ---------------------------------------------------------------------------
def init_logical_params(key, inner_neurons):
    """Xavier-normal weights, normal biases, BN gamma=1 / beta=0 (PyTorch defaults)."""
    H = inner_neurons
    ks = jax.random.split(key, 6)

    def xavier_normal(k, fan_in, fan_out):
        std = (2.0 / (fan_in + fan_out)) ** 0.5
        # stored transposed: (in, out) so the kernel does row-major matmuls
        return jax.random.normal(k, (fan_in, fan_out), jnp.float32) * std

    w1 = xavier_normal(ks[0], IN_DIM, H)
    b1 = jax.random.normal(ks[1], (H,), jnp.float32)
    w2 = xavier_normal(ks[2], H, H)
    b2 = jax.random.normal(ks[3], (H,), jnp.float32)
    w3 = xavier_normal(ks[4], H, OUT_DIM)
    b3 = jax.random.normal(ks[5], (OUT_DIM,), jnp.float32)

    g1 = jnp.ones((H,), jnp.float32)
    be1 = jnp.zeros((H,), jnp.float32)
    g2 = jnp.ones((H,), jnp.float32)
    be2 = jnp.zeros((H,), jnp.float32)

    return (w1, b1, g1, be1, w2, b2, g2, be2, w3, b3)


def pack_population(nets):
    """Pad to lane-dense shapes, store weights bf16, stack over the population axis.

    Padded weight rows/cols and padded gamma/beta/bias lanes are zero, so all
    padded lanes carry exact zeros through BN/ReLU and the final matmul.
    """
    w1s, w23s, vecs = [], [], []
    for (w1, b1, g1, be1, w2, b2, g2, be2, w3, b3) in nets:
        H = w1.shape[1]
        out = w3.shape[1]
        assert H <= H_PAD and out <= OUT_PAD

        w1p = jnp.zeros((IN_DIM, H_PAD), jnp.float32).at[:, :H].set(w1)
        w23p = jnp.zeros((H_PAD, W23_PAD), jnp.float32)
        w23p = w23p.at[:H, :H].set(w2)
        w23p = w23p.at[:H, H_PAD:H_PAD + out].set(w3)

        vec = jnp.zeros((NVEC, W23_PAD), jnp.float32)
        vec = vec.at[0, :H].set(g1)
        vec = vec.at[1, :H].set(be1)
        vec = vec.at[2, :H].set(g2)
        vec = vec.at[3, :H].set(be2)
        vec = vec.at[4, :out].set(b3)
        # b1/b2 kept for completeness (running-stats updates would need them),
        # but the kernel never reads them: they cancel under training-mode BN.
        vec = vec.at[5, :H].set(b1)
        vec = vec.at[6, :H].set(b2)

        w1s.append(w1p.astype(jnp.bfloat16))
        w23s.append(w23p.astype(jnp.bfloat16))
        vecs.append(vec)

    return (jnp.stack(w1s), jnp.stack(w23s), jnp.stack(vecs))


# ---------------------------------------------------------------------------
# Plain-JAX reference (PyTorch forward semantics; weights and MXU operands
# rounded to bf16 to match the kernel's storage / dot precision).
# ---------------------------------------------------------------------------
def reference_forward(x, logical_params):
    (w1, b1, g1, be1, w2, b2, g2, be2, w3, b3) = logical_params
    bf = lambda a: a.astype(jnp.bfloat16).astype(jnp.float32)

    def bn(h, g, be):
        m = jnp.mean(h, axis=0, keepdims=True)
        v = jnp.mean((h - m) ** 2, axis=0, keepdims=True)
        return g * (h - m) / jnp.sqrt(v + EPS) + be

    h = bf(x) @ bf(w1) + b1
    h = jnp.maximum(bn(h, g1, be1), 0.0)
    h = bf(h) @ bf(w2) + b2
    h = jnp.maximum(bn(h, g2, be2), 0.0)
    return bf(h) @ bf(w3) + b3


if __name__ == "__main__":
    key = jax.random.PRNGKey(0)
    k_x, k_p = jax.random.split(key)

    P = 4          # population of independent Nets (grid axis)
    B = 32         # batch per net
    INNER = 32     # inner_neurons

    x = jax.random.normal(k_x, (P, B, IN_DIM), jnp.float32)

    net_keys = jax.random.split(k_p, P)
    nets = [init_logical_params(net_keys[p], INNER) for p in range(P)]
    packed = pack_population(nets)

    out_padded = net_forward(x, packed)
    out_padded = jax.block_until_ready(out_padded)
    assert out_padded.shape == (P, B, OUT_PAD), out_padded.shape

    # Consumer-side slice to the logical 140 outputs (kernel keeps lane-dense slab).
    out = out_padded[:, :, :OUT_DIM]

    ref = jnp.stack([reference_forward(x[p], nets[p]) for p in range(P)])
    max_err = float(jnp.max(jnp.abs(out - ref)))
    # Tolerance covers bf16 rounding of the MXU operands (activations + weights);
    # typical error is ~1e-5, worst-case a few 1e-3 when a value straddles a
    # bf16 rounding boundary.
    assert jnp.allclose(out, ref, atol=1e-2, rtol=1e-2), f"mismatch vs reference: {max_err}"

    # Padded output lanes must stay exactly zero (zero-padded w3 cols / b3 / gamma).
    assert float(jnp.max(jnp.abs(out_padded[:, :, OUT_DIM:]))) == 0.0

    print("KERNEL_OK")
</pallas_src>

<mosaic_0001>
module attributes {stable_mosaic.version = 11 : i64} {
  func.func @net_kernel(%arg0: i32, %arg1: memref<1x32x8xf32, #tpu.memory_space<vmem>>, %arg2: memref<1x8x128xbf16, #tpu.memory_space<vmem>>, %arg3: memref<1x128x384xbf16, #tpu.memory_space<vmem>>, %arg4: memref<1x8x384xf32, #tpu.memory_space<vmem>>, %arg5: memref<1x32x256xf32, #tpu.memory_space<vmem>>) attributes {dimension_semantics = [#tpu.dimension_semantics<parallel>], iteration_bounds = array<i64: 4>, scalar_prefetch = 0 : i64, scratch_operands = 0 : i64, tpu.core_type = #tpu.core_type<tc>, window_params = [{transform_indices = @transform_0, window_bounds = array<i64: 1, 32, 8>}, {transform_indices = @transform_1, window_bounds = array<i64: 1, 8, 128>}, {transform_indices = @transform_2, window_bounds = array<i64: 1, 128, 384>}, {transform_indices = @transform_3, window_bounds = array<i64: 1, 8, 384>}, {transform_indices = @transform_4, window_bounds = array<i64: 1, 32, 256>}]} {
    %c0 = arith.constant 0 : index
    %c0_0 = arith.constant 0 : index
    %c0_1 = arith.constant 0 : index
    %0 = vector.load %arg1[%c0, %c0_0, %c0_1] : memref<1x32x8xf32, #tpu.memory_space<vmem>>, vector<1x32x8xf32>
    %1 = vector.shape_cast %0 : vector<1x32x8xf32> to vector<32x8xf32>
    %c0_2 = arith.constant 0 : index
    %c0_3 = arith.constant 0 : index
    %c0_4 = arith.constant 0 : index
    %2 = vector.load %arg2[%c0_2, %c0_3, %c0_4] : memref<1x8x128xbf16, #tpu.memory_space<vmem>>, vector<1x8x128xbf16>
    %3 = vector.shape_cast %2 : vector<1x8x128xbf16> to vector<8x128xbf16>
    %c0_5 = arith.constant 0 : index
    %c0_6 = arith.constant 0 : index
    %c0_7 = arith.constant 0 : index
    %4 = vector.load %arg3[%c0_5, %c0_6, %c0_7] : memref<1x128x384xbf16, #tpu.memory_space<vmem>>, vector<1x128x384xbf16>
    %5 = vector.shape_cast %4 : vector<1x128x384xbf16> to vector<128x384xbf16>
    %c0_8 = arith.constant 0 : index
    %c0_9 = arith.constant 0 : index
    %c0_10 = arith.constant 0 : index
    %6 = vector.load %arg4[%c0_8, %c0_9, %c0_10] : memref<1x8x384xf32, #tpu.memory_space<vmem>>, vector<1x8x384xf32>
    %7 = vector.shape_cast %6 : vector<1x8x384xf32> to vector<8x384xf32>
    %8 = vector.extract_strided_slice %7 {offsets = [0, 0], sizes = [1, 128], strides = [1, 1]} : vector<8x384xf32> to vector<1x128xf32>
    %9 = vector.extract_strided_slice %7 {offsets = [1, 0], sizes = [1, 128], strides = [1, 1]} : vector<8x384xf32> to vector<1x128xf32>
    %10 = vector.extract_strided_slice %7 {offsets = [2, 0], sizes = [1, 128], strides = [1, 1]} : vector<8x384xf32> to vector<1x128xf32>
    %11 = vector.extract_strided_slice %7 {offsets = [3, 0], sizes = [1, 128], strides = [1, 1]} : vector<8x384xf32> to vector<1x128xf32>
    %12 = vector.extract_strided_slice %7 {offsets = [4, 0], sizes = [1, 256], strides = [1, 1]} : vector<8x384xf32> to vector<1x256xf32>
    %13 = vector.extract_strided_slice %5 {offsets = [0, 0], sizes = [128, 128], strides = [1, 1]} : vector<128x384xbf16> to vector<128x128xbf16>
    %14 = vector.extract_strided_slice %5 {offsets = [0, 128], sizes = [128, 256], strides = [1, 1]} : vector<128x384xbf16> to vector<128x256xbf16>
    %15 = arith.truncf %1 : vector<32x8xf32> to vector<32x8xbf16>
    %cst = arith.constant dense<0.000000e+00> : vector<32x128xf32>
    %16 = tpu.matmul %15, %3, %cst {dimension_numbers = #tpu.dot_dimension_numbers<[1], [0], [0], [1], [0, 0, 1, 1], [], []>} : vector<32x8xbf16>, vector<8x128xbf16>, vector<32x128xf32> -> vector<32x128xf32>
    %cst_11 = arith.constant dense<0.000000e+00> : vector<128xf32>
    %17 = vector.multi_reduction <add>, %16, %cst_11 [0] : vector<32x128xf32> to vector<128xf32>
    %18 = vector.shape_cast %17 : vector<128xf32> to vector<1x128xf32>
    %cst_12 = arith.constant 3.125000e-02 : f32
    %19 = vector.broadcast %cst_12 : f32 to vector<1x128xf32>
    %20 = arith.mulf %18, %19 : vector<1x128xf32>
    %21 = arith.mulf %16, %16 : vector<32x128xf32>
    %cst_13 = arith.constant dense<0.000000e+00> : vector<128xf32>
    %22 = vector.multi_reduction <add>, %21, %cst_13 [0] : vector<32x128xf32> to vector<128xf32>
    %23 = vector.shape_cast %22 : vector<128xf32> to vector<1x128xf32>
    %cst_14 = arith.constant 3.125000e-02 : f32
    %24 = vector.broadcast %cst_14 : f32 to vector<1x128xf32>
    %25 = arith.mulf %23, %24 : vector<1x128xf32>
    %26 = arith.mulf %20, %20 : vector<1x128xf32>
    %27 = arith.subf %25, %26 : vector<1x128xf32>
    %cst_15 = arith.constant 0.000000e+00 : f32
    %28 = vector.broadcast %cst_15 : f32 to vector<1x128xf32>
    %29 = arith.maximumf %27, %28 : vector<1x128xf32>
    %cst_16 = arith.constant 9.99999974E-6 : f32
    %30 = vector.broadcast %cst_16 : f32 to vector<1x128xf32>
    %31 = arith.addf %29, %30 : vector<1x128xf32>
    %32 = math.rsqrt %31 : vector<1x128xf32>
    %33 = arith.mulf %8, %32 : vector<1x128xf32>
    %34 = arith.mulf %20, %33 : vector<1x128xf32>
    %35 = arith.subf %9, %34 : vector<1x128xf32>
    %36 = vector.broadcast %33 : vector<1x128xf32> to vector<32x128xf32>
    %37 = arith.mulf %16, %36 : vector<32x128xf32>
    %38 = vector.broadcast %35 : vector<1x128xf32> to vector<32x128xf32>
    %39 = arith.addf %37, %38 : vector<32x128xf32>
    %cst_17 = arith.constant 0.000000e+00 : f32
    %40 = vector.broadcast %cst_17 : f32 to vector<32x128xf32>
    %41 = arith.maximumf %39, %40 : vector<32x128xf32>
    %42 = arith.truncf %41 : vector<32x128xf32> to vector<32x128xbf16>
    %cst_18 = arith.constant dense<0.000000e+00> : vector<32x128xf32>
    %43 = tpu.matmul %42, %13, %cst_18 {dimension_numbers = #tpu.dot_dimension_numbers<[1], [0], [0], [1], [0, 0, 1, 1], [], []>} : vector<32x128xbf16>, vector<128x128xbf16>, vector<32x128xf32> -> vector<32x128xf32>
    %cst_19 = arith.constant dense<0.000000e+00> : vector<128xf32>
    %44 = vector.multi_reduction <add>, %43, %cst_19 [0] : vector<32x128xf32> to vector<128xf32>
    %45 = vector.shape_cast %44 : vector<128xf32> to vector<1x128xf32>
    %cst_20 = arith.constant 3.125000e-02 : f32
    %46 = vector.broadcast %cst_20 : f32 to vector<1x128xf32>
    %47 = arith.mulf %45, %46 : vector<1x128xf32>
    %48 = arith.mulf %43, %43 : vector<32x128xf32>
    %cst_21 = arith.constant dense<0.000000e+00> : vector<128xf32>
    %49 = vector.multi_reduction <add>, %48, %cst_21 [0] : vector<32x128xf32> to vector<128xf32>
    %50 = vector.shape_cast %49 : vector<128xf32> to vector<1x128xf32>
    %cst_22 = arith.constant 3.125000e-02 : f32
    %51 = vector.broadcast %cst_22 : f32 to vector<1x128xf32>
    %52 = arith.mulf %50, %51 : vector<1x128xf32>
    %53 = arith.mulf %47, %47 : vector<1x128xf32>
    %54 = arith.subf %52, %53 : vector<1x128xf32>
    %cst_23 = arith.constant 0.000000e+00 : f32
    %55 = vector.broadcast %cst_23 : f32 to vector<1x128xf32>
    %56 = arith.maximumf %54, %55 : vector<1x128xf32>
    %cst_24 = arith.constant 9.99999974E-6 : f32
    %57 = vector.broadcast %cst_24 : f32 to vector<1x128xf32>
    %58 = arith.addf %56, %57 : vector<1x128xf32>
    %59 = math.rsqrt %58 : vector<1x128xf32>
    %60 = arith.mulf %10, %59 : vector<1x128xf32>
    %61 = arith.mulf %47, %60 : vector<1x128xf32>
    %62 = arith.subf %11, %61 : vector<1x128xf32>
    %63 = vector.broadcast %60 : vector<1x128xf32> to vector<32x128xf32>
    %64 = arith.mulf %43, %63 : vector<32x128xf32>
    %65 = vector.broadcast %62 : vector<1x128xf32> to vector<32x128xf32>
    %66 = arith.addf %64, %65 : vector<32x128xf32>
    %cst_25 = arith.constant 0.000000e+00 : f32
    %67 = vector.broadcast %cst_25 : f32 to vector<32x128xf32>
    %68 = arith.maximumf %66, %67 : vector<32x128xf32>
    %69 = arith.truncf %68 : vector<32x128xf32> to vector<32x128xbf16>
    %cst_26 = arith.constant dense<0.000000e+00> : vector<32x256xf32>
    %70 = tpu.matmul %69, %14, %cst_26 {dimension_numbers = #tpu.dot_dimension_numbers<[1], [0], [0], [1], [0, 0, 1, 1], [], []>} : vector<32x128xbf16>, vector<128x256xbf16>, vector<32x256xf32> -> vector<32x256xf32>
    %71 = vector.broadcast %12 : vector<1x256xf32> to vector<32x256xf32>
    %72 = arith.addf %70, %71 : vector<32x256xf32>
    %c0_27 = arith.constant 0 : index
    %c0_28 = arith.constant 0 : index
    %c0_29 = arith.constant 0 : index
    %73 = vector.load %arg5[%c0_27, %c0_28, %c0_29] : memref<1x32x256xf32, #tpu.memory_space<vmem>>, vector<1x32x256xf32>
    %74 = vector.shape_cast %73 : vector<1x32x256xf32> to vector<32x256xf32>
    %75 = vector.shape_cast %72 : vector<32x256xf32> to vector<1x32x256xf32>
    tpu.vector_store %arg5[%c0_27, %c0_28, %c0_29], %75 {strides = array<i32>} : memref<1x32x256xf32, #tpu.memory_space<vmem>>, vector<1x32x256xf32>,
    return
  }
  func.func @transform_0(%arg0: i32) -> (i32, i32, i32) {
    %c0_i32 = arith.constant 0 : i32
    %c0_i32_0 = arith.constant 0 : i32
    %c0_i32_1 = arith.constant 0 : i32
    return %arg0, %c0_i32, %c0_i32_0 : i32, i32, i32
  }
  func.func @transform_1(%arg0: i32) -> (i32, i32, i32) {
    %c0_i32 = arith.constant 0 : i32
    %c0_i32_0 = arith.constant 0 : i32
    %c0_i32_1 = arith.constant 0 : i32
    return %arg0, %c0_i32, %c0_i32_0 : i32, i32, i32
  }
  func.func @transform_2(%arg0: i32) -> (i32, i32, i32) {
    %c0_i32 = arith.constant 0 : i32
    %c0_i32_0 = arith.constant 0 : i32
    %c0_i32_1 = arith.constant 0 : i32
    return %arg0, %c0_i32, %c0_i32_0 : i32, i32, i32
  }
  func.func @transform_3(%arg0: i32) -> (i32, i32, i32) {
    %c0_i32 = arith.constant 0 : i32
    %c0_i32_0 = arith.constant 0 : i32
    %c0_i32_1 = arith.constant 0 : i32
    return %arg0, %c0_i32, %c0_i32_0 : i32, i32, i32
  }
  func.func @transform_4(%arg0: i32) -> (i32, i32, i32) {
    %c0_i32 = arith.constant 0 : i32
    %c0_i32_0 = arith.constant 0 : i32
    %c0_i32_1 = arith.constant 0 : i32
    return %arg0, %c0_i32, %c0_i32_0 : i32, i32, i32
  }
}

</mosaic_0001>

<bundles_post_ra>
// kernel: tpu_custom_call.1
= control target key start
LH: loop header
LB: loop body
LE: loop exit
PB: predicated region body
PF: predicated region fallthrough
CT: control target
= control target key end

     0   :  { %9 = vsyncpa [#allocation3], 0  ;;  %s1365_s0 = inlined_call_operand.vmem [shape: f32[4,32,8], index: 0, kind: input, shape index: {}]   ;;  %s1366_s1 = inlined_call_operand.vmem [shape: bf16[4,8,128], index: 1, kind: input, shape index: {}]   ;;  %s1367_s2 = inlined_call_operand.hbm [shape: bf16[4,128,384], index: 2, kind: input, shape index: {}]   ;;  %s1368_s3 = inlined_call_operand.vmem [shape: f32[4,8,384], index: 3, kind: input, shape index: {}]   ;;  %s1369_s4 = inlined_call_operand.hbm [shape: f32[4,32,256], index: 4, kind: output, shape index: {}]  }
   0x1   :  { %11 = vsyncpa [#allocation3 + $0x1], 0 }
   0x2   :  { %12 = vsyncpa [#allocation4], 0 }
   0x3   :  { %14 = vsyncpa [#allocation4 + $0x1], 0  ;;  %s1158_s15 = smov 0   ;;  %s1160_s16 = smov 0  }
   0x4   :  { %s1162_s17 = smov 0   ;;  %s1164_s18 = smov 0  }
   0x5 LB: > { %s1179_s19 = sadd.s32 4294967295, %s1124_s18   ;;  %s858_s20 = sadd.s32 4294967294, %s1124_s18   ;;  %s1124_s18 = sphi %s1164_s18, %s1382_s18   ;;  %s1120_s17 = sphi %s1162_s17, %s1381_s17   ;;  %s1116_s16 = sphi %s1160_s16, %s1380_s16   ;;  %s1112_s15 = sphi %s1158_s15, %s1379_s15  }
   0x6   : > { %s1183_s21 = sadd.s32 1, %s1124_s18   ;;  %s79_s22 = sadd.s32 1, %s1120_s17 }
   0x7   : > { %s76_s23 = ssub.s32 %s1124_s18, %s1183_s21  ;;  %p86_p0 = scmp.ne.s32.totalorder %s1120_s17, %s1116_s16 }
   0x8   : > { %p77_p1 = scmp.eq.s32.totalorder %s76_s23, 0  ;;  %p87_p2 = scmp.eq.s32.totalorder %s1124_s18, 0 }
   0x9   : > { %p92_p3 = scmp.ne.s32.totalorder %s1116_s16, %s1112_s15  ;;  %p93_p4 = scmp.eq.s32.totalorder %s1179_s19, 0 }
   0xa   : > { %s1195_s24 = scalar_select %p77_p1, %s1120_s17, %s79_s22  }
   0xb   : > { %p88_p5 = por %p87_p2, %p86_p0  ;;  %p1197_p6 = por %p93_p4, %p92_p3 }
   0xc   : > { %p142_p7 = scmp.eq.s32.totalorder %s1179_s19, 3  ;;  %p148_p8 = scmp.eq.s32.totalorder %s858_s20, 3 }
   0xd   : > { %s1372_s25 = scalar_select %p1197_p6, 1, 0 }
   0xe   : > { %p957_p9 = scmp.lt.s32.totalorder %s1124_s18, 4  ;;  %p1203_p10 = por %p142_p7, %p86_p0 }
   0xf   : > { %p1207_p11 = por %p148_p8, %p92_p3  ;;  %s183_s28 = sand.u32 1, %s1120_s17  }
  0x10   : > { %s1373_s26 = scalar_select %p1203_p10, 1, 0 }
  0x11   : > { %s1374_s27 = scalar_select %p1207_p11, 1, 0 }
  0x12   : > { %s942_s29 = smul.u32 3072, %s1124_s18  ;;  %p1218_p12 = pnand %p957_p9, %p88_p5 }
  0x13   : > { %s941_s30 = smul.u32 192, %s183_s28  ;;  %s1224_s11 = scalar_lea.sflag [#allocation3], %s183_s28 }
  0x14   : > { %s1216_s7 = scalar_lea.hbm %s1367_s2, %s942_s29  ;;  %p1034_p0 = pneg %p1218_p12 }
  0x15   : > { %s187_s9 = scalar_lea.vmem [#allocation2], %s941_s30  ;;  %s1032_s12 = scalar_lea.hbm %s1216_s7, 3072 }
  0x16   : > { %s194_s10 = sshll.u32 %s187_s9, 4  ;;  %p1033_p13 = scmp.ne.s32.totalorder %s1216_s7, %s1032_s12  ;;  %s1222_s10 = int_to_ptr.vmem [resolvable:$true] %s194_s10 }
  0x17   : > { %s1037_s20 = scalar_lea.hbm %s1367_s2, 12288  ;;  %p1038_p3 = scmp.lt.s32.totalorder %s1216_s7, %s1367_s2 }
  0x18   : > { %p1035_p1 = pnand %p1034_p0, %p1033_p13  ;;  %p1039_p4 = scmp.lt.s32.totalorder %s1037_s20, %s1032_s12 }
  0x1a   : > { %p1036_p2 = pneg %p1035_p1  ;;  %p1040_p5 = por %p1039_p4, %p1038_p3 }
  0x1c   : > { %p1041_p7 = pnand %p1040_p5, %p1036_p2 }
  0x1e   : > { %1044 = shalt.err (!%p1041_p7)
}
  0x1f   : > { %s1045_s28 = scalar_lea.vmem %s1222_s10, 3072  ;;  %s1126_s29 = smov [#allocation2]  }
  0x20   : > { %p1046_p8 = scmp.ne.s32.totalorder %s1222_s10, %s1045_s28  ;;  %s1050_s30 = sshll.u32 %s1126_s29, 4  ;;  %s1051_s30 = int_to_ptr.vmem [resolvable:$false] %s1050_s30 }
  0x21   : > { %s1052_s5 = scalar_lea.vmem %s1051_s30, 6144  ;;  %p1053_p1 = scmp.lt.s32.totalorder %s1222_s10, %s1051_s30 }
  0x22   : > { %p1048_p9 = pnand %p1046_p8, %p1034_p0  ;;  %p1054_p11 = scmp.lt.s32.totalorder %s1052_s5, %s1045_s28 }
  0x24   : > { %p1049_p13 = pneg %p1048_p9  ;;  %p1055_p10 = por %p1054_p11, %p1053_p1 }
  0x26   : > { %p1056_p6 = pnand %p1055_p10, %p1049_p13 }
  0x28   : > { %1059 = shalt.err (!%p1056_p6)
}
  0x29   : > { %s1127_s6 = smov 192   ;;  %s1128_s9 = smov 12  }
  0x2a   : > { %952 = dma.hbm_to_vmem [thread:$0]  (!%p1218_p12), %s1216_s7, 3072, %s1222_s10, %s1224_s11, %s1127_s6, %s1127_s6, %s1128_s9  }
  0x2b   : > { %p862_p0 = scmp.ge.s32.totalorder %s1124_s18, 1  ;;  %p210_p2 = scmp.lt.s32.totalorder %s1124_s18, 5 }
  0x2d   : > { %p211_p3 = pnand %p862_p0, %p210_p2 }
  0x2e   : > { %s1248_s12 = sand.u32 (!%p211_p3), 1, %s1116_s16   ;;  %p1376_p6 = scmp.ne.s32.totalorder (!%p211_p3), %s1372_s25, 0 }
  0x2f   : > { %214 = sbr.rel (%p211_p3) target bundleno = 802 (0x322), region = 36  ;;  %s217_s14 = scalar_lea.sflag (!%p211_p3), [#allocation3], %s1248_s12 }
  0x30   : > { %s943_s13 = smul.u32 (!%p211_p3), 192, %s1248_s12 }
  0x32   : > { %s1252_s20 = scalar_lea.vmem (!%p211_p3), [#allocation2], %s943_s13 }
  0x34   : > { %1103 = dma.done.wait (%p1376_p6), %s217_s14, 3072  }
  0x35   : > { %1105 = vsyncadd (%p1376_p6), %s217_s14, 4294964224  ;;  %p259_p10 = scmp.lt.s32.totalorder %s1179_s19, 3  ;;  %vm322_vm0 = vcmask 1043456   ;;  %vm315_vm1 = vcmask 64512   ;;  %v996_v8 = vld [vmem:[%s1252_s20 + $0xa8] ss:$12 sps:$4 sm:$0xff]   ;;  %v410_v48 = vlaneseq }
  0x36   : > { %v998_v9 = vld [vmem:[%s1252_s20 + $0x90] ss:$12 sps:$4 sm:$0xff]   ;;  %v1000_v10 = vld [vmem:[%s1252_s20 + $0x78] ss:$12 sps:$4 sm:$0xff]   ;;  %v1002_v11 = vld [vmem:[%s1252_s20 + $0x60] ss:$12 sps:$4 sm:$0xff]  }
  0x37   : > { %s1260_s7 = scalar_select %p259_p10, %s1179_s19, 3  ;;  %v1004_v12 = vld [vmem:[%s1252_s20 + $0x48] ss:$12 sps:$4 sm:$0xff]   ;;  %v1006_v13 = vld [vmem:[%s1252_s20 + $0x30] ss:$12 sps:$4 sm:$0xff]   ;;  %v1284_v49 = vshrl.u32 %v410_v48, 7 }
  0x38   : > { %v1008_v14 = vld [vmem:[%s1252_s20 + $0x18] ss:$12 sps:$4 sm:$0xff]   ;;  %v1010_v15 = vld [vmem:[%s1252_s20] ss:$12 sps:$4 sm:$0xff]   ;;  %s863_s13 = sshll.u32 %s1248_s12, 6  ;;  %p1377_p12 = scmp.ne.s32.totalorder %s1373_s26, 0 }
  0x39   : > { %s866_s8 = sshll.u32 %s1260_s7, 2  ;;  %s899_s23 = sshll.u32 %s1260_s7, 5  ;;  %v412_v52 = vsub.s32 0, %v1284_v49  ;;  %v420_v57 = vsub.s32 1, %v1284_v49 }
  0x3a   : > { %s267_s22 = scalar_lea.vmem %s1366_s1, %s866_s8  ;;  %s263_s25 = scalar_lea.vmem %s1365_s0, %s899_s23 }
  0x3b   : > { %v278_v0 = vld [vmem:[%s267_s22] sm:$0xf]  ;;  %v275_v3 = vld [vmem:[%s263_s25 + $0x8] sm:$0xff]  ;;  %v276_v4 = vld [vmem:[%s263_s25 + $0x10] sm:$0xff]  ;;  %s944_s30 = smul.u32 24, %s1260_s7  ;;  %s258_s14 = scalar_lea.vmem [#allocation5], %s863_s13 }
  0x3c   : > { %v274_v1 = vld [vmem:[%s263_s25] sm:$0xff]  ;;  %940 = vmatprep.subr.msk.bf16.mxu1 %vm322_vm0, %v278_v0  ;;  %v324_v2 = vsel %vm322_vm0, %v278_v0, 0  ;;  %v277_v5 = vld [vmem:[%s263_s25 + $0x18] sm:$0xff]  ;;  %s900_s7 = sshll.u32 %s1179_s19, 10  ;;  %s736_s22 = scalar_lea.sflag [#allocation4], %s1248_s12 }
  0x3d   : > { %915 = vmatpush3.bf16.msra.mxu1 %v324_v2  ;;  %v313_v6 = vpack.c.bf16 %v275_v3, %v274_v1  ;;  %v314_v7 = vpack.c.bf16 %v277_v5, %v276_v4  ;;  %s1282_s9 = scalar_lea.vmem %s1368_s3, %s944_s30  ;;  %s1323_s11 = scalar_lea.hbm %s1369_s4, %s900_s7 }
  0x3e   : > { %920 = vmatprep.subr.bf16.mxu1 %v996_v8  ;;  %v1287_v50 = vld [vmem:[%s1282_s9] sm:$0xff]  ;;  %s1130_s19 = smov [#allocation5]  }
  0x3f   : > { %916 = vmatprep.mubr.msk.bf16.mxu1 %vm315_vm1, %v313_v6  ;;  %s1064_s28 = sshll.u32 %s1130_s19, 4  ;;  %s1065_s28 = int_to_ptr.vmem [resolvable:$false] %s1064_s28 }
  0x40   : > { %917 = vmatmul.mubr.msk.bf16.vlgmr.msra.gmra.mxu1 %vm315_vm1, %v314_v7  ;;  %s1066_s29 = scalar_lea.vmem %s1065_s28, 2048 }
  0x41   : > { %921 = vmatpush3.bf16.msra.mxu1 %v996_v8 }
  0x42   : > { %922 = vmatprep.subr.bf16.mxu1 %v998_v9 }
  0x45   : > { %923 = vmatpush3.bf16.msra.mxu1 %v998_v9 }
  0x46   : > { %924 = vmatprep.subr.bf16.mxu1 %v1000_v10 }
  0x49   : > { %925 = vmatpush3.bf16.msra.mxu1 %v1000_v10  ;;  %v1012_v10 = vld [vmem:[%s1252_s20 + $0xb0] ss:$12 sps:$4 sm:$0xff]  }
  0x4a   : > { %926 = vmatprep.subr.bf16.mxu1 %v1002_v11  ;;  %674 = vmatprep.subr.bf16.mxu0 %v1012_v10 }
  0x4d   : > { %927 = vmatpush3.bf16.msra.mxu1 %v1002_v11  ;;  %v1013_v11 = vld [vmem:[%s1252_s20 + $0xac] ss:$12 sps:$4 sm:$0xff]  }
  0x4e   : > { %928 = vmatprep.subr.bf16.mxu1 %v1004_v12  ;;  %675 = vmatpush1.bf16.msra.mxu0 %v1013_v11 }
  0x51   : > { %929 = vmatpush3.bf16.msra.mxu1 %v1004_v12  ;;  %v1014_v12 = vld [vmem:[%s1252_s20 + $0x98] ss:$12 sps:$4 sm:$0xff]  }
  0x52   : > { %930 = vmatprep.subr.bf16.mxu1 %v1006_v13  ;;  %676 = vmatprep.subr.bf16.mxu0 %v1014_v12 }
  0x55   : > { %931 = vmatpush3.bf16.msra.mxu1 %v1006_v13  ;;  %v1015_v13 = vld [vmem:[%s1252_s20 + $0x94] ss:$12 sps:$4 sm:$0xff]  }
  0x56   : > { %932 = vmatprep.subr.bf16.mxu1 %v1008_v14  ;;  %677 = vmatpush1.bf16.msra.mxu0 %v1015_v13 }
  0x59   : > { %933 = vmatpush3.bf16.msra.mxu1 %v1008_v14  ;;  %v1016_v14 = vld [vmem:[%s1252_s20 + $0x80] ss:$12 sps:$4 sm:$0xff]  }
  0x5a   : > { %934 = vmatprep.subr.bf16.mxu1 %v1010_v15  ;;  %678 = vmatprep.subr.bf16.mxu0 %v1016_v14 }
  0x5d   : > { %935 = vmatpush3.bf16.msra.mxu1 %v1010_v15  ;;  %v1017_v15 = vld [vmem:[%s1252_s20 + $0x7c] ss:$12 sps:$4 sm:$0xff]  }
  0x5e   : > { %679 = vmatpush1.bf16.msra.mxu0 %v1017_v15 }
 0x100   : > { %v918_v16 = vpop.f32.mrf.mxu1 }
 0x101   : > { %v387_v23 = vmul.f32 %v918_v16, %v918_v16 }
 0x102   : > { %v360_v17 = vpop.f32.mrf.mxu1 }
 0x103   : > { %v385_v20 = vmul.f32 %v360_v17, %v360_v17 }
 0x104   : > { %v919_v18 = vpop.f32.mrf.mxu1 }
 0x105   : > { %v388_v26 = vmul.f32 %v919_v18, %v919_v18 }
 0x106   : > { %v363_v19 = vpop.f32.mrf.mxu1 }
 0x107   : > { %v375_v21 = vadd.f32 %v363_v19, %v360_v17  ;;  %v386_v22 = vmul.f32 %v363_v19, %v363_v19 }
 0x109   : > { %v376_v24 = vadd.f32 %v918_v16, %v375_v21  ;;  %v389_v25 = vadd.f32 %v386_v22, %v385_v20  ;;  %v1022_v20 = vld [vmem:[%s1252_s20 + $0x38] ss:$12 sps:$4 sm:$0xff]   ;;  %v1023_v21 = vld [vmem:[%s1252_s20 + $0x34] ss:$12 sps:$4 sm:$0xff]  }
 0x10a   : > { %v1024_v22 = vld [vmem:[%s1252_s20 + $0x20] ss:$12 sps:$4 sm:$0xff]  }
 0x10b   : > { %v377_v27 = vadd.f32 %v919_v18, %v376_v24  ;;  %v390_v28 = vadd.f32 %v389_v25, %v387_v23  ;;  %v1025_v23 = vld [vmem:[%s1252_s20 + $0x1c] ss:$12 sps:$4 sm:$0xff]   ;;  %v1027_v25 = vld [vmem:[%s1252_s20 + $0x4] ss:$12 sps:$4 sm:$0xff]  }
 0x10c   : > { %v1026_v24 = vld [vmem:[%s1252_s20 + $0x8] ss:$12 sps:$4 sm:$0xff]  }
 0x10d   : > { %v378_v29 = vrot.slane %v377_v27, 4  ;;  %v391_v30 = vadd.f32 %v390_v28, %v388_v26  ;;  %v1129_v26 = vmov 0  }
 0x10e   : > { %706 = vmatprep.mubr.bf16.mxu0 %v1129_v26 }
 0x10f   : > { %v379_v31 = vadd.f32 %v378_v29, %v377_v27  ;;  %v392_v32 = vrot.slane %v391_v30, 4 }
 0x111   : > { %v380_v33 = vrot.slane %v379_v31, 2  ;;  %v393_v34 = vadd.f32 %v392_v32, %v391_v30 }
 0x113   : > { %v381_v35 = vadd.f32 %v380_v33, %v379_v31  ;;  %v394_v36 = vrot.slane %v393_v34, 2 }
 0x115   : > { %v382_v37 = vrot.slane %v381_v35, 1  ;;  %v395_v38 = vadd.f32 %v394_v36, %v393_v34 }
 0x117   : > { %v383_v39 = vadd.f32 %v382_v37, %v381_v35  ;;  %v396_v40 = vrot.slane %v395_v38, 1 }
 0x119   : > { %v384_v41 = vmul.f32 0.03125, %v383_v39  ;;  %v397_v42 = vadd.f32 %v396_v40, %v395_v38 }
 0x11b   : > { %v398_v43 = vmul.f32 0.03125, %v397_v42  ;;  %v399_v44 = vmul.f32 %v384_v41, %v384_v41 }
 0x11d   : > { %v400_v45 = vsub.f32 %v398_v43, %v399_v44 }
 0x11f   : > { %v401_v46 = vmax.f32 %v400_v45, 0.0 }
 0x121   : > { %v402_v47 = vadd.f32 1e-05, %v401_v46 }
 0x123   : > { %1028 = vrsqrt.f32 %v402_v47 }
 0x130   : > { %v1029_v51 = vpop.eup %1028 }
 0x131   : > { %v404_v53 = vmul.f32 %v1029_v51, %v1287_v50 }
 0x133   : > { %v405_v54 = vmul.f32 %v404_v53, %v384_v41  ;;  %v413_v55 = vrot.slane %v404_v53, %v412_v52 }
 0x135   : > { %v407_v56 = vrot.slane %v405_v54, 7  ;;  %v415_v59 = vmul.f32 %v413_v55, %v363_v19  ;;  %v414_v61 = vmul.f32 %v413_v55, %v360_v17  ;;  %v416_v62 = vmul.f32 %v918_v16, %v413_v55  ;;  %v1018_v16 = vld [vmem:[%s1252_s20 + $0x68] ss:$12 sps:$4 sm:$0xff]   ;;  %v1019_v17 = vld [vmem:[%s1252_s20 + $0x64] ss:$12 sps:$4 sm:$0xff]  }
 0x136   : > { %v417_v63 = vmul.f32 %v919_v18, %v413_v55  ;;  %680 = vmatprep.subr.bf16.mxu0 %v1018_v16  ;;  %v1020_v18 = vld [vmem:[%s1252_s20 + $0x50] ss:$12 sps:$4 sm:$0xff]   ;;  %v1021_v19 = vld [vmem:[%s1252_s20 + $0x4c] ss:$12 sps:$4 sm:$0xff]   ;;  %s749_s20 = sshll.u32 %s258_s14, 4  ;;  %s1318_s20 = int_to_ptr.vmem [resolvable:$true] %s749_s20 }
 0x137   : > { %v409_v58 = vsub.f32 %v1287_v50, %v407_v56  ;;  %681 = vmatpush1.bf16.msra.mxu0 %v1019_v17  ;;  %s1060_s23 = scalar_lea.vmem %s1318_s20, 1024  ;;  %p1067_p7 = scmp.lt.s32.totalorder %s1318_s20, %s1065_s28 }
 0x138   : > { %682 = vmatprep.subr.bf16.mxu0 %v1020_v18  ;;  %p1061_p11 = scmp.ne.s32.totalorder %s1318_s20, %s1060_s23  ;;  %p1068_p8 = scmp.lt.s32.totalorder %s1066_s29, %s1060_s23 }
 0x139   : > { %v421_v60 = vrot.slane %v409_v58, %v420_v57 }
 0x13a   : > { %p1062_p4 = pnand %p1061_p11, %p1377_p12  ;;  %p1069_p9 = por %p1068_p8, %p1067_p7 }
 0x13b   : > { %v423_v0 = vadd.f32 %v421_v60, %v415_v59  ;;  %v422_v1 = vadd.f32 %v421_v60, %v414_v61  ;;  %v424_v2 = vadd.f32 %v421_v60, %v416_v62  ;;  %v425_v3 = vadd.f32 %v421_v60, %v417_v63  ;;  %683 = vmatpush1.bf16.msra.mxu0 %v1021_v19 }
 0x13c   : > { %684 = vmatprep.subr.bf16.mxu0 %v1022_v20  ;;  %v566_v63 = vsub.s32 2, %v1284_v49  ;;  %v588_v20 = vsub.s32 4, %v1284_v49  ;;  %p1063_p5 = pneg %p1062_p4 }
 0x13d   : > { %v426_v4 = vmax.f32 %v422_v1, 0.0  ;;  %v427_v5 = vmax.f32 %v423_v0, 0.0  ;;  %v428_v6 = vmax.f32 %v424_v2, 0.0  ;;  %v429_v7 = vmax.f32 %v425_v3, 0.0 }
 0x13e   : > { %v574_v3 = vsub.s32 3, %v1284_v49  ;;  %p1070_p13 = pnand %p1069_p9, %p1063_p5 }
 0x13f   : > { %v430_v8 = vpack.c.bf16 %v427_v5, %v426_v4  ;;  %v431_v9 = vpack.c.bf16 %v429_v7, %v428_v6  ;;  %685 = vmatpush1.bf16.msra.mxu0 %v1023_v21  ;;  %v312_v21 = vld [vmem:[%s1282_s9 + $0x8] sm:$0xff] }
 0x140   : > { %686 = vmatprep.subr.bf16.mxu0 %v1024_v22  ;;  %v589_v22 = vrot.slane %v1287_v50, %v588_v20 }
 0x141   : > { %936 = vmatprep.mubr.bf16.mxu1 %v430_v8 }
 0x142   : > { %937 = vmatmul.mubr.bf16.vlgmr.msra.gmra.mxu1 %v431_v9 }
 0x143   : > { %687 = vmatpush1.bf16.msra.mxu0 %v1025_v23  ;;  %v593_v23 = vrot.slane %v312_v21, %v588_v20 }
 0x144   : > { %688 = vmatprep.subr.bf16.mxu0 %v1026_v24 }
 0x147   : > { %689 = vmatpush1.bf16.msra.mxu0 %v1027_v25 }
 0x202   : > { %v938_v27 = vpop.f32.mrf.mxu1 }
 0x203   : > { %v541_v34 = vmul.f32 %v938_v27, %v938_v27 }
 0x204   : > { %v514_v28 = vpop.f32.mrf.mxu1 }
 0x205   : > { %v539_v31 = vmul.f32 %v514_v28, %v514_v28 }
 0x206   : > { %v939_v29 = vpop.f32.mrf.mxu1 }
 0x207   : > { %v542_v37 = vmul.f32 %v939_v29, %v939_v29 }
 0x208   : > { %v517_v30 = vpop.f32.mrf.mxu1 }
 0x209   : > { %v529_v32 = vadd.f32 %v517_v30, %v514_v28  ;;  %v540_v33 = vmul.f32 %v517_v30, %v517_v30 }
 0x20b   : > { %v530_v35 = vadd.f32 %v938_v27, %v529_v32  ;;  %v543_v36 = vadd.f32 %v540_v33, %v539_v31 }
 0x20d   : > { %v531_v38 = vadd.f32 %v939_v29, %v530_v35  ;;  %v544_v39 = vadd.f32 %v543_v36, %v541_v34 }
 0x20f   : > { %v532_v40 = vrot.slane %v531_v38, 4  ;;  %v545_v41 = vadd.f32 %v544_v39, %v542_v37 }
 0x211   : > { %v533_v42 = vadd.f32 %v532_v40, %v531_v38  ;;  %v546_v43 = vrot.slane %v545_v41, 4 }
 0x213   : > { %v534_v44 = vrot.slane %v533_v42, 2  ;;  %v547_v45 = vadd.f32 %v546_v43, %v545_v41 }
 0x215   : > { %v535_v46 = vadd.f32 %v534_v44, %v533_v42  ;;  %v548_v47 = vrot.slane %v547_v45, 2 }
 0x217   : > { %v536_v48 = vrot.slane %v535_v46, 1  ;;  %v549_v51 = vadd.f32 %v548_v47, %v547_v45 }
 0x219   : > { %v537_v52 = vadd.f32 %v536_v48, %v535_v46  ;;  %v550_v53 = vrot.slane %v549_v51, 1 }
 0x21b   : > { %v538_v54 = vmul.f32 0.03125, %v537_v52  ;;  %v551_v55 = vadd.f32 %v550_v53, %v549_v51 }
 0x21d   : > { %v552_v56 = vmul.f32 0.03125, %v551_v55  ;;  %v553_v57 = vmul.f32 %v538_v54, %v538_v54 }
 0x21f   : > { %v554_v58 = vsub.f32 %v552_v56, %v553_v57 }
 0x221   : > { %v555_v59 = vmax.f32 %v554_v58, 0.0 }
 0x223   : > { %v556_v60 = vadd.f32 1e-05, %v555_v59 }
 0x225   : > { %1030 = vrsqrt.f32 %v556_v60 }
 0x232   : > { %v1031_v61 = vpop.eup %1030 }
 0x233   : > { %v558_v62 = vmul.f32 %v1031_v61, %v1287_v50 }
 0x235   : > { %v559_v0 = vmul.f32 %v558_v62, %v538_v54  ;;  %v567_v2 = vrot.slane %v558_v62, %v566_v63 }
 0x237   : > { %v561_v1 = vrot.slane %v559_v0, 7  ;;  %v569_v5 = vmul.f32 %v567_v2, %v517_v30  ;;  %v568_v7 = vmul.f32 %v567_v2, %v514_v28  ;;  %v570_v12 = vmul.f32 %v938_v27, %v567_v2 }
 0x238   : > { %v571_v13 = vmul.f32 %v939_v29, %v567_v2 }
 0x239   : > { %v563_v4 = vsub.f32 %v1287_v50, %v561_v1 }
 0x23b   : > { %v575_v6 = vrot.slane %v563_v4, %v574_v3 }
 0x23d   : > { %v577_v8 = vadd.f32 %v575_v6, %v569_v5  ;;  %v576_v9 = vadd.f32 %v575_v6, %v568_v7  ;;  %v578_v15 = vadd.f32 %v575_v6, %v570_v12  ;;  %v579_v16 = vadd.f32 %v575_v6, %v571_v13 }
 0x23f   : > { %v581_v10 = vmax.f32 %v577_v8, 0.0  ;;  %v580_v11 = vmax.f32 %v576_v9, 0.0  ;;  %v582_v17 = vmax.f32 %v578_v15, 0.0  ;;  %v583_v18 = vmax.f32 %v579_v16, 0.0 }
 0x241   : > { %v584_v14 = vpack.c.bf16 %v581_v10, %v580_v11  ;;  %v585_v19 = vpack.c.bf16 %v583_v18, %v582_v17 }
 0x243   : > { %707 = vmatmul.mubr.bf16.vlgmr.msra.gmra.mxu0 %v584_v14 }
 0x244   : > { %716 = vmatprep.mubr.bf16.mxu0 %v1129_v26 }
 0x24b   : > { %717 = vmatmul.mubr.bf16.gmra.mxu0 %v585_v19 }
 0x303   : > { %v708_v24 = vpop.f32.mrf.mxu0 }
 0x304   : > { %v709_v25 = vadd.f32 %v708_v24, %v589_v22 }
 0x305   : > { %v710_v27 = vpop.f32.mrf.mxu0 }
 0x306   : > { %727 = vst [vmem:[%s258_s14] sm:$0xff] %v709_v25  ;;  %v711_v28 = vadd.f32 %v710_v27, %v593_v23 }
 0x307   : > { %v712_v29 = vpop.f32.mrf.mxu0 }
 0x308   : > { %728 = vst [vmem:[%s258_s14 + $0x8] sm:$0xff] %v711_v28  ;;  %v713_v26 = vadd.f32 %v712_v29, %v589_v22 }
 0x309   : > { %v714_v30 = vpop.f32.mrf.mxu0 }
 0x30a   : > { %729 = vst [vmem:[%s258_s14 + $0x10] sm:$0xff] %v713_v26  ;;  %v715_v31 = vadd.f32 %v714_v30, %v593_v23 }
 0x30b   : > { %v718_v32 = vpop.f32.mrf.mxu0 }
 0x30c   : > { %730 = vst [vmem:[%s258_s14 + $0x18] sm:$0xff] %v715_v31  ;;  %v719_v49 = vadd.f32 %v718_v32, %v589_v22 }
 0x30d   : > { %v720_v50 = vpop.f32.mrf.mxu0 }
 0x30e   : > { %731 = vst [vmem:[%s258_s14 + $0x20] sm:$0xff] %v719_v49  ;;  %v721_v33 = vadd.f32 %v720_v50, %v593_v23 }
 0x30f   : > { %v722_v34 = vpop.f32.mrf.mxu0 }
 0x310   : > { %732 = vst [vmem:[%s258_s14 + $0x28] sm:$0xff] %v721_v33  ;;  %v723_v35 = vadd.f32 %v722_v34, %v589_v22 }
 0x311   : > { %v724_v36 = vpop.f32.mrf.mxu0 }
 0x312   : > { %733 = vst [vmem:[%s258_s14 + $0x30] sm:$0xff] %v723_v35  ;;  %v725_v37 = vadd.f32 %v724_v36, %v593_v23 }
 0x314   : > { %734 = vst [vmem:[%s258_s14 + $0x38] sm:$0xff] %v725_v37 }
 0x315   : > { %1073 = shalt.err (!%p1070_p13)
}
 0x316   : > { %s1074_s25 = scalar_lea.hbm %s1323_s11, 1024  ;;  %s1078_s6 = scalar_lea.hbm %s1369_s4, 4096 }
 0x317   : > { %p1075_p1 = scmp.ne.s32.totalorder %s1323_s11, %s1074_s25  ;;  %p1079_p3 = scmp.lt.s32.totalorder %s1323_s11, %s1369_s4 }
 0x318   : > { %p1080_p6 = scmp.lt.s32.totalorder %s1078_s6, %s1074_s25 }
 0x319   : > { %p1076_p0 = pnand %p1075_p1, %p1377_p12 }
 0x31a   : > { %p1081_p10 = por %p1080_p6, %p1079_p3 }
 0x31b   : > { %p1077_p2 = pneg %p1076_p0 }
 0x31d   : > { %p1082_p11 = pnand %p1081_p10, %p1077_p2 }
 0x31f   : > { %1085 = shalt.err (!%p1082_p11)
}
 0x320   : > { %s1131_s14 = smov 256   ;;  %s1132_s7 = smov 16  }
 0x321   : > { %947 = dma.vmem_to_hbm [thread:$0]  (%p1377_p12), %s1318_s20, 1024, %s1323_s11, %s736_s22, %s1131_s14, %s1131_s14, %s1132_s7  }
 0x322 PF: > { %p958_p4 = scmp.ge.s32.totalorder %s1124_s18, 2  ;;  %s764_s8 = sand.u32 1, %s1112_s15  }
 0x323   : > { %p1378_p5 = scmp.ne.s32.totalorder %s1374_s27, 0  ;;  %s765_s10 = scalar_lea.sflag [#allocation4], %s764_s8 }
 0x325   : > { %p954_p7 = pnand %p958_p4, %p1378_p5 }
 0x327   : > { %p955_p8 = pneg %p954_p7 }
 0x329   : > { %1107 = dma.done.wait (%p955_p8), %s765_s10, 1024  }
 0x32a   : > { %1109 = vsyncadd (%p955_p8), %s765_s10, 4294966272  ;;  %p17_p9 = scmp.ge.s32.totalorder %s1183_s21, 6   ;;  %s1379_s15 = smov %s1116_s16 }
 0x32b   : > { %s1380_s16 = smov %s1120_s17  ;;  %s1381_s17 = smov %s1195_s24 }
 0x32c   : > { %s1382_s18 = smov %s1183_s21  ;;  %19 = sbr.rel (!%p17_p9) target bundleno = 5 (0x5), region = 90 }
 0x331   :  { %770 = vsyncpa [#allocation3], 1 }
 0x332   :  { %772 = vsyncpa [#allocation3 + $0x1], 1 }
 0x333   :  { %773 = vsyncpa [#allocation4], 1 }
 0x334   :  { %775 = vsyncpa [#allocation4 + $0x1], 1 }

</bundles_post_ra>
